<compile_context>
chip_gen: v6e
topology: v6e:2x2x1
jax: 0.10.0
libtpu: 0.0.40
codegen_flags: <defaults>
</compile_context>

<pallas_src>
import functools
import math

import jax
import jax.numpy as jnp
from jax.experimental import pallas as pl
from jax.experimental.pallas import tpu as pltpu


# 48 MiB: above every chip's default scoped VMEM (16 MiB v5e, 32 MiB v6e/v7x)
# and below v7x's 64 MiB physical cap.  Re-derive per generation if raising
# tiles further (v6e can go to ~96 MiB).
_VMEM_LIMIT_BYTES = 48 * 1024 * 1024


# ----------------------------- helpers -----------------------------

def _pick_tile(dim, pref, align=8):
    """Largest divisor of `dim` that is <= `pref` and a multiple of `align`
    (full dim if `dim` <= `pref`; full dim as a last resort)."""
    if dim <= pref:
        return dim
    for t in range(pref, 0, -1):
        if dim % t == 0 and t % align == 0:
            return t
    return dim


def _gelu(x):
    # TODO(synk): HF BERT uses erf-exact gelu; tanh-approximate gelu is used
    # here since erf has no guaranteed Mosaic lowering.
    c = math.sqrt(2.0 / math.pi)
    return 0.5 * x * (1.0 + jnp.tanh(c * (x + 0.044715 * x * x * x)))


def _ln(y, g, b):
    mu = jnp.mean(y, axis=-1, keepdims=True)
    c = y - mu
    var = jnp.mean(c * c, axis=-1, keepdims=True)
    return c * jax.lax.rsqrt(var + 1e-12) * g + b


# ----------------------------- Pallas kernels -----------------------------

def _layernorm_kernel(x_ref, g_ref, b_ref, o_ref):
    x = x_ref[...].astype(jnp.float32)
    o_ref[...] = _ln(x, g_ref[...], b_ref[...]).astype(o_ref.dtype)


def layernorm(x, g, b, *, tm=512):
    """LayerNorm over the last dim; x: [M, H] (f32 or bf16) -> bf16 [M, H]."""
    M, H = x.shape
    tm = _pick_tile(M, tm)
    return pl.pallas_call(
        _layernorm_kernel,
        out_shape=jax.ShapeDtypeStruct((M, H), jnp.bfloat16),
        grid=(M // tm,),
        in_specs=[pl.BlockSpec((tm, H), lambda i: (i, 0)),
                  pl.BlockSpec((1, H), lambda i: (0, 0)),
                  pl.BlockSpec((1, H), lambda i: (0, 0))],
        out_specs=pl.BlockSpec((tm, H), lambda i: (i, 0)),
        compiler_params=pltpu.CompilerParams(
            dimension_semantics=("parallel",),
            vmem_limit_bytes=_VMEM_LIMIT_BYTES),
    )(x, g.reshape(1, H), b.reshape(1, H))


def _attention_kernel(x_ref, wq_ref, wk_ref, wv_ref, bq_ref, bk_ref, bv_ref,
                      bias_ref, o_ref, *, num_heads, head_dim,
                      heads_per_group, scale):
    """Fused QKV projection + multi-head self-attention for one batch item."""
    x = x_ref[0]                              # [S, H] bf16
    bias = bias_ref[0]                        # [1, S] f32 additive mask bias
    gw = heads_per_group * head_dim           # group lane width (128 at BERT-base)

    for g in range(num_heads // heads_per_group):
        off = g * gw
        # Head-group Q/K/V projection from lane-aligned Ref slices of the
        # weight slabs; 1/sqrt(DH) folded into Q (not into the [S,S] scores).
        qg = ((jnp.dot(x, wq_ref[:, off:off + gw],
                       preferred_element_type=jnp.float32)
               + bq_ref[:, off:off + gw]) * scale).astype(jnp.bfloat16)
        kg = (jnp.dot(x, wk_ref[:, off:off + gw],
                      preferred_element_type=jnp.float32)
              + bk_ref[:, off:off + gw]).astype(jnp.bfloat16)
        vg = (jnp.dot(x, wv_ref[:, off:off + gw],
                      preferred_element_type=jnp.float32)
              + bv_ref[:, off:off + gw]).astype(jnp.bfloat16)

        ctxs = []
        for i in range(heads_per_group):
            q = qg[:, i * head_dim:(i + 1) * head_dim]
            k = kg[:, i * head_dim:(i + 1) * head_dim]
            v = vg[:, i * head_dim:(i + 1) * head_dim]
            s = jax.lax.dot_general(q, k, (((1,), (1,)), ((), ())),
                                    preferred_element_type=jnp.float32)
            s = s + bias                                  # [1,S] -> [S,S]
            s = s - jnp.max(s, axis=-1, keepdims=True)    # stable softmax
            p = jnp.exp(s)
            p = p / jnp.sum(p, axis=-1, keepdims=True)    # exact reciprocal
            ctxs.append(jnp.dot(p.astype(v.dtype), v,
                                preferred_element_type=jnp.float32))

        # Lane-aligned (128-wide at real shapes) unmasked store of this group.
        ctx = ctxs[0] if heads_per_group == 1 else jnp.concatenate(ctxs, -1)
        o_ref[0, :, off:off + gw] = ctx.astype(o_ref.dtype)


def attention(x, q_w, k_w, v_w, q_b, k_b, v_b, bias, *, num_heads, scale):
    """x: [B,S,H] bf16, bias: [B,1,S] f32 -> context [B,S,H] bf16."""
    B, S, H = x.shape
    DH = H // num_heads
    # Group heads so a group spans >=128 lanes when possible (aligned stores).
    hpg = 1 if DH >= 128 else min(num_heads, max(1, 128 // DH))
    while num_heads % hpg:
        hpg -= 1
    return pl.pallas_call(
        functools.partial(_attention_kernel, num_heads=num_heads, head_dim=DH,
                          heads_per_group=hpg, scale=scale),
        out_shape=jax.ShapeDtypeStruct((B, S, H), jnp.bfloat16),
        grid=(B,),
        in_specs=[pl.BlockSpec((1, S, H), lambda b: (b, 0, 0)),
                  pl.BlockSpec((H, H), lambda b: (0, 0)),   # weights resident
                  pl.BlockSpec((H, H), lambda b: (0, 0)),
                  pl.BlockSpec((H, H), lambda b: (0, 0)),
                  pl.BlockSpec((1, H), lambda b: (0, 0)),
                  pl.BlockSpec((1, H), lambda b: (0, 0)),
                  pl.BlockSpec((1, H), lambda b: (0, 0)),
                  pl.BlockSpec((1, 1, S), lambda b: (b, 0, 0))],
        out_specs=pl.BlockSpec((1, S, H), lambda b: (b, 0, 0)),
        compiler_params=pltpu.CompilerParams(
            dimension_semantics=("parallel",),
            vmem_limit_bytes=_VMEM_LIMIT_BYTES),
    )(x, q_w, k_w, v_w, q_b.reshape(1, H), k_b.reshape(1, H),
      v_b.reshape(1, H), bias)


def _proj_add_ln_kernel(x_ref, w_ref, b_ref, res_ref, g_ref, be_ref, o_ref):
    # K = H fits in one block: single MXU pass, no accumulator, LN epilogue.
    y = jnp.dot(x_ref[...], w_ref[...], preferred_element_type=jnp.float32)
    y = y + b_ref[...] + res_ref[...].astype(jnp.float32)
    o_ref[...] = _ln(y, g_ref[...], be_ref[...]).astype(o_ref.dtype)


def matmul_bias_add_ln(x, w, b, res, g, beta, *, tm=512):
    """[M,K]@[K,H] + bias + residual + LayerNorm, K un-tiled (full block)."""
    M, K = x.shape
    H = w.shape[1]
    tm = _pick_tile(M, tm)
    return pl.pallas_call(
        _proj_add_ln_kernel,
        out_shape=jax.ShapeDtypeStruct((M, H), jnp.bfloat16),
        grid=(M // tm,),
        in_specs=[pl.BlockSpec((tm, K), lambda i: (i, 0)),
                  pl.BlockSpec((K, H), lambda i: (0, 0)),
                  pl.BlockSpec((1, H), lambda i: (0, 0)),
                  pl.BlockSpec((tm, H), lambda i: (i, 0)),
                  pl.BlockSpec((1, H), lambda i: (0, 0)),
                  pl.BlockSpec((1, H), lambda i: (0, 0))],
        out_specs=pl.BlockSpec((tm, H), lambda i: (i, 0)),
        compiler_params=pltpu.CompilerParams(
            dimension_semantics=("parallel",),
            vmem_limit_bytes=_VMEM_LIMIT_BYTES),
    )(x, w, b.reshape(1, H), res, g.reshape(1, H), beta.reshape(1, H))


def _ffn_kernel(x_ref, iw_ref, ib_ref, ow_ref, ob_ref, res_ref, g_ref, be_ref,
                o_ref, acc_ref):
    j = pl.program_id(1)

    @pl.when(j == 0)
    def _():
        acc_ref[...] = jnp.zeros_like(acc_ref)

    # [tm, H] @ [H, ti] -> gelu -> [tm, ti] @ [ti, H]; the intermediate stays
    # in VMEM / vregs and never round-trips HBM.
    inter = jnp.dot(x_ref[...], iw_ref[...],
                    preferred_element_type=jnp.float32) + ib_ref[...]
    inter = _gelu(inter)
    acc_ref[...] += jnp.dot(inter.astype(jnp.bfloat16), ow_ref[...],
                            preferred_element_type=jnp.float32)

    @pl.when(j == pl.num_programs(1) - 1)
    def _():
        y = acc_ref[...] + ob_ref[...] + res_ref[...].astype(jnp.float32)
        o_ref[...] = _ln(y, g_ref[...], be_ref[...]).astype(o_ref.dtype)


def ffn_fused(x, i_w, i_b, o_w, o_b, res, g, beta, *, tm=512, ti=1024):
    """Fused BERT FFN: gelu(x@i_w+i_b)@o_w+o_b + residual -> LayerNorm."""
    M, H = x.shape
    I = i_w.shape[1]
    tm, ti = _pick_tile(M, tm), _pick_tile(I, ti, align=128)
    return pl.pallas_call(
        _ffn_kernel,
        out_shape=jax.ShapeDtypeStruct((M, H), jnp.bfloat16),
        grid=(M // tm, I // ti),
        in_specs=[pl.BlockSpec((tm, H), lambda i, j: (i, 0)),
                  pl.BlockSpec((H, ti), lambda i, j: (0, j)),
                  pl.BlockSpec((1, ti), lambda i, j: (0, j)),
                  pl.BlockSpec((ti, H), lambda i, j: (j, 0)),
                  pl.BlockSpec((1, H), lambda i, j: (0, 0)),
                  pl.BlockSpec((tm, H), lambda i, j: (i, 0)),
                  pl.BlockSpec((1, H), lambda i, j: (0, 0)),
                  pl.BlockSpec((1, H), lambda i, j: (0, 0))],
        out_specs=pl.BlockSpec((tm, H), lambda i, j: (i, 0)),
        scratch_shapes=[pltpu.VMEM((tm, H), jnp.float32)],
        compiler_params=pltpu.CompilerParams(
            dimension_semantics=("parallel", "arbitrary"),
            vmem_limit_bytes=_VMEM_LIMIT_BYTES),
    )(x, i_w, i_b.reshape(1, I), o_w, o_b.reshape(1, H),
      res, g.reshape(1, H), beta.reshape(1, H))


# --------------------------- parameters (synthetic) ---------------------------

def init_bert_params(key, *, vocab, max_pos, H, NH, I, L, num_labels,
                     type_vocab=2):
    del NH  # head count passed separately to forward
    scale = 0.02
    keys = iter(jax.random.split(key, 8 + L * 8))

    def w(shape, dtype=jnp.float32):
        return (scale * jax.random.normal(next(keys), shape,
                                          dtype=jnp.float32)).astype(dtype)

    params = {
        "word_emb": w((vocab, H)),
        "pos_emb": w((max_pos, H)),
        "type_emb": w((type_vocab, H)),
        "emb_ln_g": jnp.ones((H,), jnp.float32),
        "emb_ln_b": jnp.zeros((H,), jnp.float32),
        "pool_w": w((H, H)),
        "pool_b": jnp.zeros((H,), jnp.float32),
        "cls_w": w((H, num_labels)),
        "cls_b": jnp.zeros((num_labels,), jnp.float32),
        "layers": [],
    }
    for _ in range(L):
        params["layers"].append({
            # separate Q/K/V slabs (lane-aligned per-head-group slices in-kernel)
            "q_w": w((H, H), jnp.bfloat16), "q_b": jnp.zeros((H,), jnp.float32),
            "k_w": w((H, H), jnp.bfloat16), "k_b": jnp.zeros((H,), jnp.float32),
            "v_w": w((H, H), jnp.bfloat16), "v_b": jnp.zeros((H,), jnp.float32),
            "o_w": w((H, H), jnp.bfloat16), "o_b": jnp.zeros((H,), jnp.float32),
            "ln1_g": jnp.ones((H,), jnp.float32),
            "ln1_b": jnp.zeros((H,), jnp.float32),
            "i_w": w((H, I), jnp.bfloat16), "i_b": jnp.zeros((I,), jnp.float32),
            "out_w": w((I, H), jnp.bfloat16),
            "out_b": jnp.zeros((H,), jnp.float32),
            "ln2_g": jnp.ones((H,), jnp.float32),
            "ln2_b": jnp.zeros((H,), jnp.float32),
        })
    return params


# ------------------------------ forward pass ------------------------------

def bert_classifier_forward(params, input_ids, attention_mask, *, num_heads):
    B, S = input_ids.shape
    H = params["word_emb"].shape[1]
    DH = H // num_heads

    # embeddings (gathers are glue; LayerNorm runs in Pallas, residual stream
    # is kept in bf16 from here on)
    tok_type = jnp.zeros((B, S), jnp.int32)
    emb = (jnp.take(params["word_emb"], input_ids, axis=0)
           + params["pos_emb"][:S][None, :, :]
           + jnp.take(params["type_emb"], tok_type, axis=0))
    h = layernorm(emb.reshape(B * S, H), params["emb_ln_g"], params["emb_ln_b"])
    # dropout: eval-mode no-op

    # HF extended attention mask, kept as [B, 1, S]; broadcast happens in-kernel
    bias = ((1.0 - attention_mask.astype(jnp.float32)) * -10000.0)[:, None, :]

    scale = 1.0 / math.sqrt(DH)
    for lp in params["layers"]:
        # fused QKV projection + attention; no [B,S,3H] HBM round trip
        ctx = attention(h.reshape(B, S, H),
                        lp["q_w"], lp["k_w"], lp["v_w"],
                        lp["q_b"], lp["k_b"], lp["v_b"],
                        bias, num_heads=num_heads, scale=scale)   # [B,S,H] bf16
        # attention output projection + residual + LayerNorm (single K block)
        h = matmul_bias_add_ln(ctx.reshape(B * S, H), lp["o_w"], lp["o_b"],
                               h, lp["ln1_g"], lp["ln1_b"])
        # fused FFN (+ residual + LayerNorm); [B*S, I] intermediate stays in VMEM
        h = ffn_fused(h, lp["i_w"], lp["i_b"], lp["out_w"], lp["out_b"],
                      h, lp["ln2_g"], lp["ln2_b"])

    # pooler + classifier heads are microscopic -> plain jnp (f32)
    cls_tok = h.reshape(B, S, H)[:, 0, :].astype(jnp.float32)      # [B, H]
    pooled = jnp.tanh(cls_tok @ params["pool_w"] + params["pool_b"])
    logits = pooled @ params["cls_w"] + params["cls_b"]            # [B, num_labels]
    # return_dict=False in the PyTorch module => tuple of (logits,)
    return (logits,)


if __name__ == "__main__":
    B, S, H, NH, I, L = 2, 8, 32, 2, 64, 2
    VOCAB, MAX_POS, NUM_LABELS = 100, 16, 2

    key = jax.random.PRNGKey(0)
    k_param, k_ids = jax.random.split(key)
    params = init_bert_params(k_param, vocab=VOCAB, max_pos=MAX_POS, H=H, NH=NH,
                              I=I, L=L, num_labels=NUM_LABELS)

    input_ids = jax.random.randint(k_ids, (B, S), 0, VOCAB, dtype=jnp.int32)
    mask = jnp.ones((B, S), jnp.int32).at[1, 6:].set(0)   # second example padded

    out = bert_classifier_forward(params, input_ids, mask, num_heads=NH)
    logits = jax.block_until_ready(out[0])
    assert logits.shape == (B, NUM_LABELS)
    assert logits.dtype == jnp.float32
    print("KERNEL_OK")
</pallas_src>

<mosaic_0001>
module attributes {stable_mosaic.version = 11 : i64} {
  func.func @_layernorm_kernel(%arg0: i32, %arg1: memref<16x32xf32, #tpu.memory_space<vmem>>, %arg2: memref<1x32xf32, #tpu.memory_space<vmem>>, %arg3: memref<1x32xf32, #tpu.memory_space<vmem>>, %arg4: memref<16x32xbf16, #tpu.memory_space<vmem>>) attributes {dimension_semantics = [#tpu.dimension_semantics<parallel>], iteration_bounds = array<i64: 1>, scalar_prefetch = 0 : i64, scratch_operands = 0 : i64, tpu.core_type = #tpu.core_type<tc>, window_params = [{transform_indices = @transform_0, window_bounds = array<i64: 16, 32>}, {pipeline_mode = #tpu.pipeline_mode<synchronous>, transform_indices = @transform_1, window_bounds = array<i64: 1, 32>}, {pipeline_mode = #tpu.pipeline_mode<synchronous>, transform_indices = @transform_2, window_bounds = array<i64: 1, 32>}, {transform_indices = @transform_3, window_bounds = array<i64: 16, 32>}]} {
    %c0 = arith.constant 0 : index
    %c0_0 = arith.constant 0 : index
    %0 = vector.load %arg1[%c0, %c0_0] : memref<16x32xf32, #tpu.memory_space<vmem>>, vector<16x32xf32>
    %c0_1 = arith.constant 0 : index
    %c0_2 = arith.constant 0 : index
    %1 = vector.load %arg2[%c0_1, %c0_2] : memref<1x32xf32, #tpu.memory_space<vmem>>, vector<1x32xf32>
    %c0_3 = arith.constant 0 : index
    %c0_4 = arith.constant 0 : index
    %2 = vector.load %arg3[%c0_3, %c0_4] : memref<1x32xf32, #tpu.memory_space<vmem>>, vector<1x32xf32>
    %cst = arith.constant dense<0.000000e+00> : vector<16xf32>
    %3 = vector.multi_reduction <add>, %0, %cst [1] : vector<16x32xf32> to vector<16xf32>
    %4 = vector.shape_cast %3 : vector<16xf32> to vector<16x1xf32>
    %cst_5 = arith.constant 3.200000e+01 : f32
    %5 = vector.broadcast %cst_5 : f32 to vector<16x1xf32>
    %6 = arith.divf %4, %5 : vector<16x1xf32>
    %7 = vector.broadcast %6 : vector<16x1xf32> to vector<16x32xf32>
    %8 = arith.subf %0, %7 : vector<16x32xf32>
    %9 = arith.mulf %8, %8 : vector<16x32xf32>
    %cst_6 = arith.constant dense<0.000000e+00> : vector<16xf32>
    %10 = vector.multi_reduction <add>, %9, %cst_6 [1] : vector<16x32xf32> to vector<16xf32>
    %11 = vector.shape_cast %10 : vector<16xf32> to vector<16x1xf32>
    %cst_7 = arith.constant 3.200000e+01 : f32
    %12 = vector.broadcast %cst_7 : f32 to vector<16x1xf32>
    %13 = arith.divf %11, %12 : vector<16x1xf32>
    %cst_8 = arith.constant 9.99999996E-13 : f32
    %14 = vector.broadcast %cst_8 : f32 to vector<16x1xf32>
    %15 = arith.addf %13, %14 : vector<16x1xf32>
    %16 = math.rsqrt %15 : vector<16x1xf32>
    %17 = vector.broadcast %16 : vector<16x1xf32> to vector<16x32xf32>
    %18 = arith.mulf %8, %17 : vector<16x32xf32>
    %19 = vector.broadcast %1 : vector<1x32xf32> to vector<16x32xf32>
    %20 = arith.mulf %18, %19 : vector<16x32xf32>
    %21 = vector.broadcast %2 : vector<1x32xf32> to vector<16x32xf32>
    %22 = arith.addf %20, %21 : vector<16x32xf32>
    %23 = arith.truncf %22 : vector<16x32xf32> to vector<16x32xbf16>
    %c0_9 = arith.constant 0 : index
    %c0_10 = arith.constant 0 : index
    %24 = vector.load %arg4[%c0_9, %c0_10] : memref<16x32xbf16, #tpu.memory_space<vmem>>, vector<16x32xbf16>
    tpu.vector_store %arg4[%c0_9, %c0_10], %23 {strides = array<i32>} : memref<16x32xbf16, #tpu.memory_space<vmem>>, vector<16x32xbf16>,
    return
  }
  func.func @transform_0(%arg0: i32) -> (i32, i32) {
    %c0_i32 = arith.constant 0 : i32
    %c0_i32_0 = arith.constant 0 : i32
    return %arg0, %c0_i32 : i32, i32
  }
  func.func @transform_1(%arg0: i32) -> (i32, i32) {
    %c0_i32 = arith.constant 0 : i32
    %c0_i32_0 = arith.constant 0 : i32
    %c0_i32_1 = arith.constant 0 : i32
    return %c0_i32, %c0_i32_0 : i32, i32
  }
  func.func @transform_2(%arg0: i32) -> (i32, i32) {
    %c0_i32 = arith.constant 0 : i32
    %c0_i32_0 = arith.constant 0 : i32
    %c0_i32_1 = arith.constant 0 : i32
    return %c0_i32, %c0_i32_0 : i32, i32
  }
  func.func @transform_3(%arg0: i32) -> (i32, i32) {
    %c0_i32 = arith.constant 0 : i32
    %c0_i32_0 = arith.constant 0 : i32
    return %arg0, %c0_i32 : i32, i32
  }
}

</mosaic_0001>

<bundles_post_ra>
// kernel: tpu_custom_call.1
= control target key start
LH: loop header
LB: loop body
LE: loop exit
PB: predicated region body
PF: predicated region fallthrough
CT: control target
= control target key end

     0   :  { %8 = vsyncpa [#allocation3], 0  ;;  %s207_s0 = inlined_call_operand.hbm [shape: f32[16,32], index: 0, kind: input, shape index: {}]   ;;  %s208_s1 = inlined_call_operand.vmem [shape: f32[1,32], index: 1, kind: input, shape index: {}]   ;;  %s209_s2 = inlined_call_operand.vmem [shape: f32[1,32], index: 2, kind: input, shape index: {}]   ;;  %s210_s3 = inlined_call_operand.hbm [shape: bf16[16,32], index: 3, kind: output, shape index: {}]  }
   0x1   :  { %9 = vsyncpa [#allocation4], 0  ;;  %s165_s12 = smov [#allocation2]  }
   0x2   :  { %s15_s13 = sshll.u32 %s165_s12, 4  ;;  %s16_s13 = int_to_ptr.vmem [resolvable:$true] %s15_s13 }
   0x3   :  { %s129_s14 = scalar_lea.vmem %s16_s13, 256  ;;  %p134_p1 = scmp.lt.s32.totalorder %s16_s13, %s16_s13 }
   0x4   :  { %p130_p0 = scmp.ne.s32.totalorder %s16_s13, %s129_s14  ;;  %p135_p2 = scmp.lt.s32.totalorder %s129_s14, %s129_s14 }
   0x6   :  { %p136_p3 = por %p135_p2, %p134_p1 }
   0x8   :  { %p137_p4 = pnand %p136_p3, %p130_p0 }
   0xa   :  { %140 = shalt.err (!%p137_p4)
}
   0xb   :  { %s166_s15 = smov 128   ;;  %s167_s16 = smov 8  }
   0xc   :  { %21 = dma.hbm_to_vmem [thread:$0]  %s207_s0, 256, %s16_s13, [#allocation3], %s166_s15, %s166_s15, %s167_s16  }
   0xd   :  { %161 = dma.done.wait [#allocation3], 256  }
   0xe   :  { %162 = vsyncadd [#allocation3], 4294967040  ;;  %vm33_vm0 = vcmask 261120   ;;  %v29_v0 = vld [vmem:[#allocation2] sm:$0xff]  ;;  %v30_v1 = vld [vmem:[#allocation2 + $0x8] sm:$0xff]  ;;  %vm85_vm1 = vcmask 257024  }
   0xf   :  { %v34_v2 = vsel %vm33_vm0, %v29_v0, 0.0  ;;  %v37_v3 = vsel %vm33_vm0, %v30_v1, 0.0  ;;  %v105_v21 = vld [vmem:[%s208_s1] ss:$0 sm:$0xff]  ;;  %s168_s22 = smov [#allocation5]  }
  0x10   :  { %35 = vadd.xlane.f32.xlu0 %v34_v2  ;;  %v106_v23 = vld [vmem:[%s209_s2] ss:$0 sm:$0xff]  ;;  %s93_s23 = sshll.u32 %s168_s22, 4  ;;  %s94_s23 = int_to_ptr.vmem [resolvable:$true] %s93_s23 }
  0x11   :  { %s141_s1 = scalar_lea.vmem %s94_s23, 128  ;;  %p146_p6 = scmp.lt.s32.totalorder %s94_s23, %s94_s23 }
  0x12   :  { %p142_p5 = scmp.ne.s32.totalorder %s94_s23, %s141_s1  ;;  %p147_p7 = scmp.lt.s32.totalorder %s141_s1, %s141_s1 }
  0x14   :  { %38 = vadd.xlane.f32.xlu0 %v37_v3  ;;  %p148_p8 = por %p147_p7, %p146_p6 }
  0x16   :  { %p149_p9 = pnand %p148_p8, %p142_p5 }
  0x99   :  { %v36_v4 = vpop.xlane.xlu0 %35 }
  0x9a   :  { %v41_v5 = vmul.f32 0.03125, %v36_v4 }
  0x9c   :  { %v43_v6 = vsub.f32 %v29_v0, %v41_v5 }
  0x9d   :  { %v39_v7 = vpop.xlane.xlu0 %38 }
  0x9e   :  { %v42_v8 = vmul.f32 0.03125, %v39_v7  ;;  %v45_v9 = vmul.f32 %v43_v6, %v43_v6 }
  0xa0   :  { %v44_v10 = vsub.f32 %v30_v1, %v42_v8  ;;  %v47_v11 = vsel %vm33_vm0, %v45_v9, 0.0 }
  0xa1   :  { %48 = vadd.xlane.f32.xlu1 %v47_v11 }
  0xa2   :  { %v46_v12 = vmul.f32 %v44_v10, %v44_v10 }
  0xa4   :  { %v50_v13 = vsel %vm33_vm0, %v46_v12, 0.0 }
  0xa5   :  { %51 = vadd.xlane.f32.xlu1 %v50_v13 }
 0x12a   :  { %v49_v14 = vpop.xlane.xlu1 %48 }
 0x12b   :  { %v53_v15 = vmul.f32 0.03125, %v49_v14 }
 0x12d   :  { %v55_v16 = vadd.f32 1e-12, %v53_v15 }
 0x12e   :  { %v52_v17 = vpop.xlane.xlu1 %51 }
 0x12f   :  { %117 = vrsqrt.f32 %v55_v16  ;;  %v54_v18 = vmul.f32 0.03125, %v52_v17 }
 0x131   :  { %v56_v19 = vadd.f32 1e-12, %v54_v18 }
 0x133   :  { %119 = vrsqrt.f32 %v56_v19 }
 0x13c   :  { %v118_v20 = vpop.eup %117 }
 0x13d   :  { %v59_v22 = vmul.f32 %v118_v20, %v43_v6 }
 0x13f   :  { %v67_v24 = vmul.f32 %v105_v21, %v59_v22 }
 0x140   :  { %v120_v25 = vpop.eup %119 }
 0x141   :  { %v60_v26 = vmul.f32 %v120_v25, %v44_v10  ;;  %v75_v27 = vadd.f32 %v106_v23, %v67_v24 }
 0x143   :  { %v68_v28 = vmul.f32 %v105_v21, %v60_v26  ;;  %v109_v29 = vpack.c.bf16 %v75_v27, %v75_v27 }
 0x145   :  { %v76_v30 = vadd.f32 %v106_v23, %v68_v28  ;;  %86 = vst.msk [vmem:[#allocation5] sm:$0xf] %vm85_vm1, %v109_v29 }
 0x147   :  { %v110_v31 = vpack.c.bf16 %v76_v30, %v76_v30 }
 0x149   :  { %87 = vst.msk [vmem:[#allocation5 + $0x4] sm:$0xf] %vm85_vm1, %v110_v31 }
 0x14a   :  { %152 = shalt.err (!%p149_p9)
}
 0x14b   :  { %s169_s2 = smov 64   ;;  %s170_s24 = smov 4  }
 0x14c   :  { %99 = dma.vmem_to_hbm [thread:$0]  %s94_s23, 128, %s210_s3, [#allocation4], %s169_s2, %s169_s2, %s170_s24  }
 0x14d   :  { %163 = dma.done.wait [#allocation4], 128  }
 0x14e   :  { %164 = vsyncadd [#allocation4], 4294967168 }
 0x14f   :  { %103 = vsyncpa [#allocation3], 1 }
 0x150   :  { %104 = vsyncpa [#allocation4], 1 }

</bundles_post_ra>
